<compile_context>
chip_gen: v6e
topology: v6e:2x2x1
jax: 0.10.0
libtpu: 0.0.40
codegen_flags: <defaults>
</compile_context>

<pallas_src>
import functools

import jax
import jax.numpy as jnp
import numpy as np
from jax.experimental import pallas as pl
from jax.experimental.pallas import tpu as pltpu


def _round_up(a, b):
    return ((a + b - 1) // b) * b


def temporal_conv_kernel(x_ref, xh_ref, w_ref, scale_ref, bias_ref, o_ref, *,
                         n_taps, shift):
    """One output tile: (C_out, tm) = sum_k W_k @ X[:, k*shift : k*shift+tm], then BN."""
    tm = o_ref.shape[-1]
    # Current tile plus the temporal halo columns: (C_in, tm + HB).
    x_full = jnp.concatenate([x_ref[...], xh_ref[...]], axis=-1)

    # K back-to-back MXU pushes, accumulated in f32 registers (no scratch round-trips).
    acc = jnp.dot(w_ref[0], x_full[:, :tm], preferred_element_type=jnp.float32)
    for k in range(1, n_taps):
        acc = acc + jnp.dot(w_ref[k], x_full[:, k * shift:k * shift + tm],
                            preferred_element_type=jnp.float32)

    # Fused conv-bias + BatchNorm (eval mode) as a per-output-channel scale & shift.
    o_ref[...] = (acc * scale_ref[...] + bias_ref[...]).astype(o_ref.dtype)


def temporal_conv(x, w, b_conv, gamma, beta, run_mean, run_var, *,
                  kernel_size, stride=1, dilation=1, eps=1e-5,
                  tile_cols=1024, compute_dtype=None):
    """x: (N, C_in, T, V) NCHW.  w: (C_out, C_in, K, 1) PyTorch OIHW.  Returns NCHW."""
    N, C_in, T, V = x.shape
    C_out = w.shape[0]
    K = kernel_size

    pad = (K + (K - 1) * (dilation - 1) - 1) // 2
    eff = dilation * (K - 1) + 1
    T_pad = T + 2 * pad
    T_out_s1 = T_pad - eff + 1                    # stride-1 output length
    T_out = (T_pad - eff) // stride + 1           # PyTorch Conv2d output length
    assert T_out_s1 > 0, "temporal extent too small for this kernel/dilation"

    shift = dilation * V                          # flat-column shift between adjacent taps
    halo = (K - 1) * dilation * V                 # extra columns needed past each tile
    M = T_out_s1 * V                              # valid output columns per batch element

    # Tile geometry: tm multiple of HB (and of 128 -> lane-dense loads & stores).
    HB = _round_up(max(halo, 1), 128)             # halo block width
    n_target = max(1, -(-M // max(tile_cols, 128)))
    tm = _round_up(-(-M // n_target), HB)
    n_tiles = -(-M // tm)
    R_out = n_tiles * tm                          # padded output columns per batch
    R_in = R_out + HB                             # padded input columns per batch

    # NCHW -> (N, C_in, T*V); temporal zero-padding is just column padding here.
    x_flat = x.reshape(N, C_in, T * V)
    w_taps = jnp.transpose(w[:, :, :, 0], (2, 0, 1))          # (K, C_out, C_in)
    if compute_dtype is not None:                             # bf16 MXU path (v6e/v7x)
        x_flat = x_flat.astype(compute_dtype)
        w_taps = w_taps.astype(compute_dtype)
    x_in = jnp.pad(x_flat, ((0, 0), (0, 0), (pad * V, R_in - T * V - pad * V)))

    # BatchNorm (eval mode, running stats) fused with the conv bias:
    #   y = conv * s + (beta + (b_conv - mean) * s),   s = gamma / sqrt(var + eps)
    # TODO(synk): training-mode BN (batch statistics) is not computed in-kernel.
    inv_std = 1.0 / jnp.sqrt(run_var.astype(jnp.float32) + eps)
    s = gamma.astype(jnp.float32) * inv_std
    scale = s.reshape(C_out, 1)
    bias = (beta.astype(jnp.float32) +
            (b_conv.astype(jnp.float32) - run_mean.astype(jnp.float32)) * s
            ).reshape(C_out, 1)

    kernel = functools.partial(temporal_conv_kernel, n_taps=K, shift=shift)
    halo_step = tm // HB

    out_flat = pl.pallas_call(
        kernel,
        out_shape=jax.ShapeDtypeStruct((N, C_out, R_out), x.dtype),
        grid_spec=pltpu.PrefetchScalarGridSpec(
            num_scalar_prefetch=0,
            grid=(N, n_tiles),
            in_specs=[
                # main input block (C_in, tm)
                pl.BlockSpec((None, C_in, tm), lambda n, i: (n, 0, i)),
                # small halo block: the first HB columns of the next tile (same array)
                pl.BlockSpec((None, C_in, HB),
                             lambda n, i: (n, 0, (i + 1) * halo_step)),
                # weights resident in VMEM (constant block index -> loaded once)
                pl.BlockSpec((K, C_out, C_in), lambda n, i: (0, 0, 0)),
                # fused BN scale / bias, resident
                pl.BlockSpec((C_out, 1), lambda n, i: (0, 0)),
                pl.BlockSpec((C_out, 1), lambda n, i: (0, 0)),
            ],
            out_specs=pl.BlockSpec((None, C_out, tm), lambda n, i: (n, 0, i)),
        ),
        compiler_params=pltpu.CompilerParams(
            dimension_semantics=("parallel", "parallel")),
    )(x_in, x_in, w_taps, scale, bias)

    # Drop column padding; the result is already NCHW-flattened, so this reshape is free.
    out = out_flat[:, :, :M].reshape(N, C_out, T_out_s1, V)
    if stride != 1:
        # TODO(synk): stride>1 computes the dense (stride-1) conv and subsamples; correct
        # but does stride-x redundant work.
        out = out[:, :, ::stride, :]
    return out


def reference(x, w, b_conv, gamma, beta, run_mean, run_var, *,
              kernel_size, stride=1, dilation=1, eps=1e-5):
    pad = (kernel_size + (kernel_size - 1) * (dilation - 1) - 1) // 2
    y = jax.lax.conv_general_dilated(
        x, w, window_strides=(stride, 1),
        padding=((pad, pad), (0, 0)), rhs_dilation=(dilation, 1),
        dimension_numbers=("NCHW", "OIHW", "NCHW"))
    y = y + b_conv.reshape(1, -1, 1, 1)
    y = (y - run_mean.reshape(1, -1, 1, 1)) / jnp.sqrt(run_var.reshape(1, -1, 1, 1) + eps)
    return y * gamma.reshape(1, -1, 1, 1) + beta.reshape(1, -1, 1, 1)


if __name__ == "__main__":
    # Small shapes consistent with TemporalConv's forward (NCHW pose tensors).
    N, C_in, C_out, T, V = 2, 16, 32, 16, 4
    K, stride, dilation = 3, 1, 1

    key = jax.random.PRNGKey(0)
    k_x, k_w, k_b, k_g, k_be, k_m, k_v = jax.random.split(key, 7)

    x = jax.random.normal(k_x, (N, C_in, T, V), dtype=jnp.float32)
    w = jax.random.normal(k_w, (C_out, C_in, K, 1), dtype=jnp.float32) * 0.1
    b_conv = jax.random.normal(k_b, (C_out,), dtype=jnp.float32) * 0.1
    gamma = 1.0 + 0.1 * jax.random.normal(k_g, (C_out,), dtype=jnp.float32)
    beta = 0.1 * jax.random.normal(k_be, (C_out,), dtype=jnp.float32)
    run_mean = 0.1 * jax.random.normal(k_m, (C_out,), dtype=jnp.float32)
    run_var = 0.5 + jnp.abs(jax.random.normal(k_v, (C_out,), dtype=jnp.float32))

    ref = reference(x, w, b_conv, gamma, beta, run_mean, run_var,
                    kernel_size=K, stride=stride, dilation=dilation)

    # f32 path (faithful to the PyTorch module's numerics).
    out = temporal_conv(x, w, b_conv, gamma, beta, run_mean, run_var,
                        kernel_size=K, stride=stride, dilation=dilation)
    out = jax.block_until_ready(out)
    np.testing.assert_allclose(np.asarray(out), np.asarray(ref), rtol=1e-4, atol=1e-4)

    # bf16-input path (recommended on v6e/v7x): halves input HBM bytes, f32 accumulation
    # and f32 BN epilogue are kept, so the error stays small.
    out_bf16 = temporal_conv(x, w, b_conv, gamma, beta, run_mean, run_var,
                             kernel_size=K, stride=stride, dilation=dilation,
                             compute_dtype=jnp.bfloat16)
    out_bf16 = jax.block_until_ready(out_bf16)
    np.testing.assert_allclose(np.asarray(out_bf16), np.asarray(ref),
                               rtol=5e-2, atol=5e-2)

    print("KERNEL_OK")
</pallas_src>

<mosaic_0001>
module attributes {stable_mosaic.version = 11 : i64} {
  func.func @temporal_conv_kernel(%arg0: i32, %arg1: i32, %arg2: memref<1x16x128xf32, #tpu.memory_space<vmem>>, %arg3: memref<1x16x128xf32, #tpu.memory_space<vmem>>, %arg4: memref<3x32x16xf32, #tpu.memory_space<vmem>>, %arg5: memref<32x1xf32, #tpu.memory_space<vmem>>, %arg6: memref<32x1xf32, #tpu.memory_space<vmem>>, %arg7: memref<1x32x128xf32, #tpu.memory_space<vmem>>) attributes {dimension_semantics = [#tpu.dimension_semantics<parallel>, #tpu.dimension_semantics<parallel>], iteration_bounds = array<i64: 2, 1>, scalar_prefetch = 0 : i64, scratch_operands = 0 : i64, tpu.core_type = #tpu.core_type<tc>, window_params = [{transform_indices = @transform_0, window_bounds = array<i64: 1, 16, 128>}, {transform_indices = @transform_1, window_bounds = array<i64: 1, 16, 128>}, {pipeline_mode = #tpu.pipeline_mode<synchronous>, transform_indices = @transform_2, window_bounds = array<i64: 3, 32, 16>}, {pipeline_mode = #tpu.pipeline_mode<synchronous>, transform_indices = @transform_3, window_bounds = array<i64: 32, 1>}, {pipeline_mode = #tpu.pipeline_mode<synchronous>, transform_indices = @transform_4, window_bounds = array<i64: 32, 1>}, {transform_indices = @transform_5, window_bounds = array<i64: 1, 32, 128>}]} {
    %c0 = arith.constant 0 : index
    %c0_0 = arith.constant 0 : index
    %c0_1 = arith.constant 0 : index
    %0 = vector.load %arg2[%c0, %c0_0, %c0_1] : memref<1x16x128xf32, #tpu.memory_space<vmem>>, vector<1x16x128xf32>
    %1 = vector.shape_cast %0 : vector<1x16x128xf32> to vector<16x128xf32>
    %c0_2 = arith.constant 0 : index
    %c0_3 = arith.constant 0 : index
    %c0_4 = arith.constant 0 : index
    %2 = vector.load %arg3[%c0_2, %c0_3, %c0_4] : memref<1x16x128xf32, #tpu.memory_space<vmem>>, vector<1x16x128xf32>
    %3 = vector.shape_cast %2 : vector<1x16x128xf32> to vector<16x128xf32>
    %4 = tpu.concatenate %1, %3 in 1 : vector<16x128xf32>, vector<16x128xf32> -> vector<16x256xf32>
    %c0_5 = arith.constant 0 : index
    %c0_6 = arith.constant 0 : index
    %c0_7 = arith.constant 0 : index
    %5 = vector.load %arg4[%c0_5, %c0_6, %c0_7] : memref<3x32x16xf32, #tpu.memory_space<vmem>>, vector<1x32x16xf32>
    %6 = vector.shape_cast %5 : vector<1x32x16xf32> to vector<32x16xf32>
    %7 = vector.extract_strided_slice %4 {offsets = [0, 0], sizes = [16, 128], strides = [1, 1]} : vector<16x256xf32> to vector<16x128xf32>
    %cst = arith.constant dense<0.000000e+00> : vector<32x128xf32>
    %8 = tpu.matmul %6, %7, %cst {dimension_numbers = #tpu.dot_dimension_numbers<[1], [0], [0], [1], [0, 0, 1, 1], [], []>} : vector<32x16xf32>, vector<16x128xf32>, vector<32x128xf32> -> vector<32x128xf32>
    %c1 = arith.constant 1 : index
    %c0_8 = arith.constant 0 : index
    %c0_9 = arith.constant 0 : index
    %9 = vector.load %arg4[%c1, %c0_8, %c0_9] : memref<3x32x16xf32, #tpu.memory_space<vmem>>, vector<1x32x16xf32>
    %10 = vector.shape_cast %9 : vector<1x32x16xf32> to vector<32x16xf32>
    %11 = vector.extract_strided_slice %4 {offsets = [0, 4], sizes = [16, 128], strides = [1, 1]} : vector<16x256xf32> to vector<16x128xf32>
    %cst_10 = arith.constant dense<0.000000e+00> : vector<32x128xf32>
    %12 = tpu.matmul %10, %11, %cst_10 {dimension_numbers = #tpu.dot_dimension_numbers<[1], [0], [0], [1], [0, 0, 1, 1], [], []>} : vector<32x16xf32>, vector<16x128xf32>, vector<32x128xf32> -> vector<32x128xf32>
    %13 = arith.addf %8, %12 : vector<32x128xf32>
    %c2 = arith.constant 2 : index
    %c0_11 = arith.constant 0 : index
    %c0_12 = arith.constant 0 : index
    %14 = vector.load %arg4[%c2, %c0_11, %c0_12] : memref<3x32x16xf32, #tpu.memory_space<vmem>>, vector<1x32x16xf32>
    %15 = vector.shape_cast %14 : vector<1x32x16xf32> to vector<32x16xf32>
    %16 = vector.extract_strided_slice %4 {offsets = [0, 8], sizes = [16, 128], strides = [1, 1]} : vector<16x256xf32> to vector<16x128xf32>
    %cst_13 = arith.constant dense<0.000000e+00> : vector<32x128xf32>
    %17 = tpu.matmul %15, %16, %cst_13 {dimension_numbers = #tpu.dot_dimension_numbers<[1], [0], [0], [1], [0, 0, 1, 1], [], []>} : vector<32x16xf32>, vector<16x128xf32>, vector<32x128xf32> -> vector<32x128xf32>
    %18 = arith.addf %13, %17 : vector<32x128xf32>
    %c0_14 = arith.constant 0 : index
    %c0_15 = arith.constant 0 : index
    %19 = vector.load %arg5[%c0_14, %c0_15] : memref<32x1xf32, #tpu.memory_space<vmem>>, vector<32x1xf32>
    %20 = vector.broadcast %19 : vector<32x1xf32> to vector<32x128xf32>
    %21 = arith.mulf %18, %20 : vector<32x128xf32>
    %c0_16 = arith.constant 0 : index
    %c0_17 = arith.constant 0 : index
    %22 = vector.load %arg6[%c0_16, %c0_17] : memref<32x1xf32, #tpu.memory_space<vmem>>, vector<32x1xf32>
    %23 = vector.broadcast %22 : vector<32x1xf32> to vector<32x128xf32>
    %24 = arith.addf %21, %23 : vector<32x128xf32>
    %c0_18 = arith.constant 0 : index
    %c0_19 = arith.constant 0 : index
    %c0_20 = arith.constant 0 : index
    %25 = vector.load %arg7[%c0_18, %c0_19, %c0_20] : memref<1x32x128xf32, #tpu.memory_space<vmem>>, vector<1x32x128xf32>
    %26 = vector.shape_cast %25 : vector<1x32x128xf32> to vector<32x128xf32>
    %27 = vector.shape_cast %24 : vector<32x128xf32> to vector<1x32x128xf32>
    tpu.vector_store %arg7[%c0_18, %c0_19, %c0_20], %27 {strides = array<i32>} : memref<1x32x128xf32, #tpu.memory_space<vmem>>, vector<1x32x128xf32>,
    return
  }
  func.func @transform_0(%arg0: i32, %arg1: i32) -> (i32, i32, i32) {
    %c0_i32 = arith.constant 0 : i32
    %c0_i32_0 = arith.constant 0 : i32
    return %arg0, %c0_i32, %arg1 : i32, i32, i32
  }
  func.func @transform_1(%arg0: i32, %arg1: i32) -> (i32, i32, i32) {
    %c1_i32 = arith.constant 1 : i32
    %0 = arith.addi %arg1, %c1_i32 : i32
    %c1_i32_0 = arith.constant 1 : i32
    %1 = arith.muli %0, %c1_i32_0 : i32
    %c0_i32 = arith.constant 0 : i32
    %c0_i32_1 = arith.constant 0 : i32
    return %arg0, %c0_i32, %1 : i32, i32, i32
  }
  func.func @transform_2(%arg0: i32, %arg1: i32) -> (i32, i32, i32) {
    %c0_i32 = arith.constant 0 : i32
    %c0_i32_0 = arith.constant 0 : i32
    %c0_i32_1 = arith.constant 0 : i32
    %c0_i32_2 = arith.constant 0 : i32
    return %c0_i32, %c0_i32_0, %c0_i32_1 : i32, i32, i32
  }
  func.func @transform_3(%arg0: i32, %arg1: i32) -> (i32, i32) {
    %c0_i32 = arith.constant 0 : i32
    %c0_i32_0 = arith.constant 0 : i32
    %c0_i32_1 = arith.constant 0 : i32
    return %c0_i32, %c0_i32_0 : i32, i32
  }
  func.func @transform_4(%arg0: i32, %arg1: i32) -> (i32, i32) {
    %c0_i32 = arith.constant 0 : i32
    %c0_i32_0 = arith.constant 0 : i32
    %c0_i32_1 = arith.constant 0 : i32
    return %c0_i32, %c0_i32_0 : i32, i32
  }
  func.func @transform_5(%arg0: i32, %arg1: i32) -> (i32, i32, i32) {
    %c0_i32 = arith.constant 0 : i32
    %c0_i32_0 = arith.constant 0 : i32
    return %arg0, %c0_i32, %arg1 : i32, i32, i32
  }
}

</mosaic_0001>

<bundles_post_ra>
// kernel: tpu_custom_call.1
= control target key start
LH: loop header
LB: loop body
LE: loop exit
PB: predicated region body
PF: predicated region fallthrough
CT: control target
= control target key end

     0   :  { %10 = vsyncpa [#allocation5], 0  ;;  %s1355_s0 = inlined_call_operand.vmem [shape: f32[2,16,256], index: 0, kind: input, shape index: {}]   ;;  %s1356_s1 = inlined_call_operand.vmem [shape: f32[2,16,256], index: 1, kind: input, shape index: {}]   ;;  %s1357_s2 = inlined_call_operand.vmem [shape: f32[3,32,16], index: 2, kind: input, shape index: {}]   ;;  %s1358_s3 = inlined_call_operand.vmem [shape: f32[32,1], index: 3, kind: input, shape index: {}]   ;;  %s1359_s4 = inlined_call_operand.vmem [shape: f32[32,1], index: 4, kind: input, shape index: {}]   ;;  %s1360_s5 = inlined_call_operand.hbm [shape: f32[2,32,128], index: 5, kind: output, shape index: {}]  }
   0x1   :  { %12 = vsyncpa [#allocation5 + $0x1], 0  ;;  %s1139_s18 = smov 0   ;;  %s1141_s19 = smov 0  }
   0x2   :  { %s1143_s20 = smov 0   ;;  %s1145_s21 = smov 0  }
   0x3   :  { %s1147_s22 = smov 0   ;;  %s1149_s23 = smov 0  }
   0x4 LB: > { %s867_s24 = sadd.s32 4294967295, %s1101_s23   ;;  %s868_s25 = sadd.s32 4294967294, %s1101_s23   ;;  %s1101_s23 = sphi %s1149_s23, %s18_s23   ;;  %s1097_s22 = sphi %s1147_s22, %s1368_s22   ;;  %s1093_s21 = sphi %s1145_s21, %s1367_s21   ;;  %s1089_s20 = sphi %s1143_s20, %s1366_s20   ;;  %s1085_s19 = sphi %s1141_s19, %s1365_s19   ;;  %s1081_s18 = sphi %s1139_s18, %s1364_s18  }
   0x5   : > { %s30_s26 = sadd.s32 1, %s1097_s22  ;;  %s39_s27 = sadd.s32 1, %s1089_s20 }
   0x6   : > { %p32_p0 = scmp.ge.s32.totalorder %s30_s26, 2  ;;  %p46_p1 = scmp.ne.s32.totalorder %s1089_s20, %s1085_s19 }
   0x7   : > { %p47_p2 = scmp.eq.s32.totalorder %s1101_s23, 0  ;;  %p171_p3 = scmp.eq.s32.totalorder %s867_s24, 1 }
   0x8   : > { %s1370_s26 = smov (%p32_p0, %s30_s26), 0  ;;  %p176_p6 = scmp.ne.s32.totalorder %s1085_s19, %s1081_s18 }
   0x9   : > { %p1178_p4 = por %p47_p2, %p46_p1  ;;  %p1182_p5 = por %p171_p3, %p46_p1 }
   0xa   : > { %s34_s30 = ssub.s32 %s1097_s22, %s1370_s26  ;;  %p177_p8 = scmp.eq.s32.totalorder %s868_s25, 1 }
   0xb   : > { %p37_p7 = scmp.eq.s32.totalorder %s34_s30, 0  ;;  %p870_p10 = scmp.ge.s32.totalorder %s1101_s23, 2 }
   0xc   : > { %p1193_p9 = por %p177_p8, %p176_p6 }
   0xd   : > { %s1191_s6 = scalar_select %p37_p7, %s1089_s20, %s39_s27  }
   0xe   : > { %202 = sbr.rel (%p870_p10) target bundleno = 29 (0x1d), region = 28 }
  0x13   : > { %205 = sbr.rel (!%p1178_p4) target bundleno = 24 (0x18), region = 32  ;;  %s207_s8 = sand.u32 (%p1178_p4), 1, %s1089_s20  }
  0x14   : > { %s908_s9 = sshll.u32 (%p1178_p4), %s1097_s22, 5  ;;  %s871_s10 = sshll.u32 (%p1178_p4), %s207_s8, 4 }
  0x15   : > { %s213_s13 = scalar_lea.vmem (%p1178_p4), %s1355_s0, %s908_s9  ;;  %s209_s14 = scalar_lea.vmem (%p1178_p4), [#allocation2], %s871_s10 }
  0x16   : > { %v244_v0 = vld [vmem:[%s213_s13] sm:$0xff] (%p1178_p4)  ;;  %v246_v1 = vld [vmem:[%s213_s13 + $0x10] sm:$0xff] (%p1178_p4) }
  0x17   : > { %245 = vst [vmem:[%s209_s14] sm:$0xff] (%p1178_p4), %v244_v0  ;;  %247 = vst [vmem:[%s209_s14 + $0x8] sm:$0xff] (%p1178_p4), %v246_v1 }
  0x18 PF: > { %253 = sbr.rel (!%p1178_p4) target bundleno = 29 (0x1d), region = 70  ;;  %s255_s15 = sand.u32 (%p1178_p4), 1, %s1089_s20  }
  0x19   : > { %s909_s16 = sshll.u32 (%p1178_p4), %s1097_s22, 5  ;;  %s874_s17 = sshll.u32 (%p1178_p4), %s255_s15, 4 }
  0x1a   : > { %s801_s27 = scalar_lea.vmem (%p1178_p4), %s1356_s1, %s909_s16  ;;  %s257_s30 = scalar_lea.vmem (%p1178_p4), [#allocation3], %s874_s17 }
  0x1b   : > { %v877_v2 = vld [vmem:[%s801_s27 + $0x8] sm:$0xff] (%p1178_p4)  ;;  %v878_v3 = vld [vmem:[%s801_s27 + $0x18] sm:$0xff] (%p1178_p4) }
  0x1c   : > { %294 = vst [vmem:[%s257_s30] sm:$0xff] (%p1178_p4), %v877_v2  ;;  %296 = vst [vmem:[%s257_s30 + $0x8] sm:$0xff] (%p1178_p4), %v878_v3 }
  0x1d PF: > { %p879_p11 = scmp.ge.s32.totalorder %s1101_s23, 1  ;;  %p301_p12 = scmp.lt.s32.totalorder %s1101_s23, 3 }
  0x1f   : > { %p302_p13 = pnand %p879_p11, %p301_p12 }
  0x20   : > { %s1217_s28 = sand.u32 (!%p302_p13), 1, %s1085_s19   ;;  %s1103_s14 = smov (!%p302_p13), 124  }
  0x21   : > { %305 = sbr.rel (%p302_p13) target bundleno = 390 (0x186), region = 108  ;;  %s880_s12 = sshll.u32 (!%p302_p13), %s1217_s28, 4 }
  0x22   : > { %s310_s13 = scalar_lea.vmem (!%p302_p13), [#allocation2], %s880_s12  ;;  %s317_s15 = scalar_lea.vmem (!%p302_p13), [#allocation3], %s880_s12 }
  0x23   : > { %s1104_s16 = smov (!%p302_p13), 120   ;;  %s882_s11 = sshll.u32 (!%p302_p13), %s1217_s28, 5 }
  0x24   : > { %s345_s12 = scalar_lea.vmem (!%p302_p13), [#allocation4], %s882_s11  ;;  %s752_s24 = scalar_lea.sflag (!%p302_p13), [#allocation5], %s1217_s28 }
  0x25   : > { %s1106_s25 = smov (!%p302_p13), [#allocation4]  }
  0x26   : > { %v885_v4 = vld [vmem:[%s1357_s2 + $0x30] sm:$0xff]  ;;  %vm377_vm0 = vcmask 130048   ;;  %v883_v5 = vld [vmem:[%s1357_s2 + $0x20] sm:$0xff]  ;;  %v348_v6 = vld [vmem:[%s310_s13 + $0x8] sm:$0xff]  ;;  %v1105_v10 = vmov 0   ;;  %vm372_vm1 = vcmask 1014784  }
  0x27   : > { %936 = vmatprep.mubr.msk.f32.mxu1 %vm377_vm0, %v885_v4  ;;  %933 = vmatprep.mubr.msk.f32.mxu0 %vm377_vm0, %v883_v5  ;;  %v1228_v7 = vld [vmem:[%s310_s13] sm:$0xff]  ;;  %v350_v8 = vld [vmem:[%s317_s15 + $0x8] sm:$0xff]  ;;  %vm585_vm2 = vcmask 982016   ;;  %s766_s13 = sshll.u32 %s345_s12, 4  ;;  %s1029_s27 = sshll.u32 %s1106_s25, 4  ;;  %s1302_s13 = int_to_ptr.vmem [resolvable:$true] %s766_s13  ;;  %s1030_s27 = int_to_ptr.vmem [resolvable:$false] %s1029_s27 }
  0x28   : > { %368 = vrot.lane.b32.xlu0 %v348_v6, %s1103_s14  ;;  %364 = vrot.lane.b32.xlu1 %v1228_v7, %s1103_s14  ;;  %v349_v9 = vld [vmem:[%s317_s15] sm:$0xff]  ;;  %v692_v12 = vld [vmem:[%s1358_s3 + $0x8] sm:$0xff]  ;;  %s1031_s30 = scalar_lea.vmem %s1030_s27, 1024  ;;  %p1032_p3 = scmp.lt.s32.totalorder %s1302_s13, %s1030_s27 }
  0x29   : > { %1024 = vset.pattern.permute.xlu1 %v1105_v10  ;;  %1023 = vset.pattern.permute.xlu0 %v1105_v10  ;;  %v691_v11 = vld [vmem:[%s1358_s3] sm:$0xff]  ;;  %v694_v13 = vld [vmem:[%s1358_s3 + $0x18] sm:$0xff]  ;;  %v693_v14 = vld [vmem:[%s1358_s3 + $0x10] sm:$0xff] }
  0x2a   : > { %v720_v15 = vld [vmem:[%s1359_s4 + $0x8] sm:$0xff]  ;;  %v719_v16 = vld [vmem:[%s1359_s4] sm:$0xff]  ;;  %v722_v17 = vld [vmem:[%s1359_s4 + $0x18] sm:$0xff] }
  0x2b   : > { %v721_v18 = vld [vmem:[%s1359_s4 + $0x10] sm:$0xff]  ;;  %v886_v25 = vld [vmem:[%s1357_s2 + $0x38] sm:$0xff]  ;;  %v884_v28 = vld [vmem:[%s1357_s2 + $0x28] sm:$0xff] }
  0x2c   : > { %370 = vrot.lane.b32.xlu0 %v350_v8, %s1103_s14  ;;  %366 = vrot.lane.b32.xlu1 %v349_v9, %s1103_s14  ;;  %v351_v30 = vld [vmem:[%s1357_s2] sm:$0xff]  ;;  %v352_v33 = vld [vmem:[%s1357_s2 + $0x8] sm:$0xff]  ;;  %s910_s14 = sshll.u32 %s1093_s21, 9  ;;  %s1025_s21 = scalar_lea.vmem %s1302_s13, 512 }
  0x2d   : > { %v895_v35 = vld [vmem:[%s1357_s2 + $0x40] sm:$0xff]  ;;  %v353_v36 = vld [vmem:[%s1357_s2 + $0x10] sm:$0xff]  ;;  %v896_v37 = vld [vmem:[%s1357_s2 + $0x48] sm:$0xff]  ;;  %s1307_s17 = scalar_lea.hbm %s1360_s5, %s910_s14  ;;  %p1026_p0 = scmp.ne.s32.totalorder %s1302_s13, %s1025_s21 }
  0x2e   : > { %v897_v38 = vld [vmem:[%s1357_s2 + $0x50] sm:$0xff]  ;;  %v354_v39 = vld [vmem:[%s1357_s2 + $0x18] sm:$0xff]  ;;  %p1033_p4 = scmp.lt.s32.totalorder %s1031_s30, %s1025_s21 }
  0x2f   : > { %v898_v40 = vld [vmem:[%s1357_s2 + $0x58] sm:$0xff]  ;;  %p1027_p1 = pnand %p1026_p0, %p1182_p5 }
  0x30   : > { %581 = vrot.lane.b32.xlu0 %v348_v6, %s1104_s16  ;;  %583 = vrot.lane.b32.xlu1 %v350_v8, %s1104_s16  ;;  %p1034_p6 = por %p1033_p4, %p1032_p3 }
  0x31   : > { %p1028_p2 = pneg %p1027_p1 }
  0x33   : > { %p1035_p7 = pnand %p1034_p6, %p1028_p2 }
  0x34   : > { %577 = vrot.lane.b32.xlu0 %v1228_v7, %s1104_s16  ;;  %579 = vrot.lane.b32.xlu1 %v349_v9, %s1104_s16 }
  0x38   : > { %697 = vperm.xlu0 %1023, %v691_v11   ;;  %702 = vperm.xlu1 %1024, %v692_v12  }
  0x3c   : > { %712 = vperm.xlu0 %1023, %v694_v13   ;;  %707 = vperm.xlu1 %1024, %v693_v14  }
  0x40   : > { %730 = vperm.xlu0 %1023, %v720_v15   ;;  %725 = vperm.xlu1 %1024, %v719_v16  }
  0x44   : > { %740 = vperm.xlu0 %1023, %v722_v17   ;;  %735 = vperm.xlu1 %1024, %v721_v18  }
  0x9a   : > { %v369_v19 = vpop.permute.xlu0 %368  ;;  %v365_v20 = vpop.permute.xlu1 %364 }
  0x9e   : > { %v371_v21 = vpop.permute.xlu0 %370  ;;  %v367_v22 = vpop.permute.xlu1 %366 }
  0x9f   : > { %v374_v23 = vsel %vm372_vm1, %v369_v19, %v371_v21  ;;  %v373_v24 = vsel %vm372_vm1, %v365_v20, %v367_v22 }
  0xa0   : > { %929 = vmatprep.subr.mxu0 %v374_v23  ;;  %959 = vmatprep.subr.mxu1 %v374_v23 }
  0xa1   : > { %930 = vmatpush3.msra.mxu0 %v374_v23  ;;  %961 = vmatpush3.msra.mxu1 %v374_v23 }
  0xa2   : > { %v582_v26 = vpop.permute.xlu0 %581  ;;  %931 = vmatprep.subr.mxu0 %v373_v24  ;;  %960 = vmatprep.subr.mxu1 %v373_v24  ;;  %v584_v27 = vpop.permute.xlu1 %583 }
  0xa3   : > { %932 = vmatpush3.msra.mxu0 %v373_v24  ;;  %962 = vmatpush3.msra.mxu1 %v373_v24  ;;  %v587_v29 = vsel %vm585_vm2, %v582_v26, %v584_v27 }
  0xa4   : > { %937 = vmatmul.mubr.msk.f32.vlgmr.msra.gmra.mxu1 %vm377_vm0, %v886_v25  ;;  %939 = vmatprep.subr.mxu1 %v348_v6 }
  0xa5   : > { %949 = vmatprep.subr.mxu0 %v587_v29  ;;  %934 = vmatmul.mubr.msk.f32.vlgmr.msra.gmra.mxu0 %vm377_vm0, %v884_v28 }
  0xa6   : > { %940 = vmatpush3.msra.mxu1 %v348_v6  ;;  %950 = vmatpush3.msra.mxu0 %v587_v29  ;;  %v578_v31 = vpop.permute.xlu0 %577  ;;  %v580_v32 = vpop.permute.xlu1 %579 }
  0xa7   : > { %941 = vmatprep.subr.mxu1 %v1228_v7  ;;  %943 = vmatprep.mubr.msk.f32.mxu1 %vm377_vm0, %v351_v30  ;;  %v586_v34 = vsel %vm585_vm2, %v578_v31, %v580_v32 }
  0xa8   : > { %942 = vmatpush3.msra.mxu1 %v1228_v7  ;;  %951 = vmatprep.subr.mxu0 %v586_v34 }
  0xa9   : > { %944 = vmatmul.mubr.msk.f32.vlgmr.msra.gmra.mxu1 %vm377_vm0, %v352_v33  ;;  %952 = vmatpush3.msra.mxu0 %v586_v34 }
  0xaa   : > { %953 = vmatprep.mubr.msk.f32.mxu0 %vm377_vm0, %v895_v35  ;;  %946 = vmatprep.mubr.msk.f32.mxu1 %vm377_vm0, %v353_v36 }
  0xab   : > { %954 = vmatmul.mubr.msk.f32.vlgmr.msra.gmra.mxu0 %vm377_vm0, %v896_v37 }
  0xac   : > { %956 = vmatprep.mubr.msk.f32.mxu0 %vm377_vm0, %v897_v38 }
  0xad   : > { %947 = vmatmul.mubr.msk.f32.gmra.mxu1 %vm377_vm0, %v354_v39 }
  0xaf   : > { %957 = vmatmul.mubr.msk.f32.gmra.mxu0 %vm377_vm0, %v898_v40 }
  0xb3   : > { %v698_v41 = vpop.permute.xlu0 %697  ;;  %v703_v42 = vpop.permute.xlu1 %702 }
  0xb7   : > { %v713_v45 = vpop.permute.xlu0 %712  ;;  %v708_v47 = vpop.permute.xlu1 %707 }
  0xbb   : > { %v731_v53 = vpop.permute.xlu0 %730  ;;  %v726_v58 = vpop.permute.xlu1 %725 }
  0xbf   : > { %v741_v8 = vpop.permute.xlu0 %740  ;;  %v736_v11 = vpop.permute.xlu1 %735 }
 0x164   : > { %v938_v43 = vpop.f32.mrf.mxu1 }
 0x165   : > { %v935_v44 = vpop.f32.mrf.mxu0 }
 0x166   : > { %v466_v46 = vpop.f32.mrf.mxu1 }
 0x167   : > { %v456_v48 = vpop.f32.mrf.mxu0 }
 0x169   : > { %v945_v49 = vpop.f32.mrf.mxu1 }
 0x16a   : > { %v559_v50 = vadd.f32 %v945_v49, %v935_v44 }
 0x16b   : > { %v553_v51 = vpop.f32.mrf.mxu1  ;;  %v955_v52 = vpop.f32.mrf.mxu0 }
 0x16c   : > { %v554_v54 = vadd.f32 %v553_v51, %v456_v48  ;;  %v688_v55 = vadd.f32 %v955_v52, %v559_v50 }
 0x16d   : > { %v948_v56 = vpop.f32.mrf.mxu1  ;;  %v668_v57 = vpop.f32.mrf.mxu0 }
 0x16e   : > { %v716_v59 = vmul.f32 %v703_v42, %v688_v55  ;;  %v569_v60 = vadd.f32 %v948_v56, %v938_v43  ;;  %v687_v61 = vadd.f32 %v668_v57, %v554_v54 }
 0x16f   : > { %v563_v62 = vpop.f32.mrf.mxu1  ;;  %v958_v63 = vpop.f32.mrf.mxu0 }
 0x170   : > { %v744_v0 = vadd.f32 %v731_v53, %v716_v59  ;;  %v715_v1 = vmul.f32 %v698_v41, %v687_v61  ;;  %v564_v2 = vadd.f32 %v563_v62, %v466_v46  ;;  %v690_v3 = vadd.f32 %v958_v63, %v569_v60 }
 0x171   : > { %v678_v4 = vpop.f32.mrf.mxu0 }
 0x172   : > { %748 = vst [vmem:[%s345_s12 + $0x8] sm:$0xff] %v744_v0  ;;  %v743_v5 = vadd.f32 %v726_v58, %v715_v1  ;;  %v718_v6 = vmul.f32 %v713_v45, %v690_v3  ;;  %v689_v7 = vadd.f32 %v678_v4, %v564_v2 }
 0x174   : > { %747 = vst [vmem:[%s345_s12] sm:$0xff] %v743_v5  ;;  %v746_v9 = vadd.f32 %v741_v8, %v718_v6  ;;  %v717_v10 = vmul.f32 %v708_v47, %v689_v7 }
 0x176   : > { %750 = vst [vmem:[%s345_s12 + $0x18] sm:$0xff] %v746_v9  ;;  %v745_v12 = vadd.f32 %v736_v11, %v717_v10 }
 0x178   : > { %749 = vst [vmem:[%s345_s12 + $0x10] sm:$0xff] %v745_v12 }
 0x179   : > { %1038 = shalt.err (!%p1035_p7)
}
 0x17a   : > { %s1039_s8 = scalar_lea.hbm %s1307_s17, 512  ;;  %s1043_s11 = scalar_lea.hbm %s1360_s5, 1024 }
 0x17b   : > { %p1040_p8 = scmp.ne.s32.totalorder %s1307_s17, %s1039_s8  ;;  %p1044_p13 = scmp.lt.s32.totalorder %s1307_s17, %s1360_s5 }
 0x17c   : > { %p1045_p0 = scmp.lt.s32.totalorder %s1043_s11, %s1039_s8 }
 0x17d   : > { %p1041_p11 = pnand %p1040_p8, %p1182_p5 }
 0x17e   : > { %p1046_p1 = por %p1045_p0, %p1044_p13 }
 0x17f   : > { %p1042_p12 = pneg %p1041_p11 }
 0x181   : > { %p1047_p2 = pnand %p1046_p1, %p1042_p12 }
 0x183   : > { %1050 = shalt.err (!%p1047_p2)
}
 0x184   : > { %s1107_s15 = smov 128   ;;  %s1108_s16 = smov 8  }
 0x185   : > { %963 = dma.vmem_to_hbm [thread:$0]  (%p1182_p5), %s1302_s13, 512, %s1307_s17, %s752_s24, %s1107_s15, %s1107_s15, %s1108_s16  }
 0x186 PF: > { %s781_s21 = sand.u32 1, %s1081_s18   ;;  %p966_p3 = pnand %p870_p10, %p1193_p9 }
 0x187   : > { %s782_s25 = scalar_lea.sflag [#allocation5], %s781_s21 }
 0x188   : > { %p967_p4 = pneg %p966_p3 }
 0x18a   : > { %1076 = dma.done.wait (%p967_p4), %s782_s25, 512  }
 0x18b   : > { %1078 = vsyncadd (%p967_p4), %s782_s25, 4294966784  ;;  %s18_s23 = sadd.s32 1, %s1101_s23   ;;  %s1364_s18 = smov %s1085_s19 }
 0x18c   : > { %p15_p6 = scmp.ge.s32.totalorder %s18_s23, 4   ;;  %s1365_s19 = smov %s1089_s20 }
 0x18d   : > { %s1366_s20 = smov %s1191_s6  ;;  %s1367_s21 = smov %s1097_s22 }
 0x18e   : > { %s1368_s22 = smov %s1370_s26  ;;  %17 = sbr.rel (!%p15_p6) target bundleno = 4 (0x4), region = 166 }
 0x193   :  { %787 = vsyncpa [#allocation5], 1 }
 0x194   :  { %789 = vsyncpa [#allocation5 + $0x1], 1 }

</bundles_post_ra>
